<compile_context>
chip_gen: v6e
topology: v6e:2x2x1
jax: 0.10.0
libtpu: 0.0.40
codegen_flags: <defaults>
</compile_context>

<pallas_src>
import functools

import jax
import jax.numpy as jnp
from jax.experimental import pallas as pl
from jax.experimental.pallas import tpu as pltpu


# --------------------------------------------------------------------------------
# Pallas kernels (transposed layout: feature channels on sublanes, points on lanes)
# --------------------------------------------------------------------------------
def _pp_mlp_t_kernel(x_ref, w1, b1, w2, b2, w3, b3, w4, b4, o_ref):
    # Fused 4-layer point-net MLP on a [F, tm] point tile (BN folded, eval mode).
    # Weights are pre-transposed [C_out, C_in] bf16; biases are f32 [C_out, 1].
    # Input block is f32 (cast to bf16 here), dots run bf16 on the MXU with f32
    # accumulation, bias/ReLU stay f32, and the final store is bf16 (halves HBM
    # writeback + the bytes the downstream pooling reads).
    h = x_ref[...].astype(jnp.bfloat16)                                # bf16 [F, tm]
    h = jnp.dot(w1[...], h, preferred_element_type=jnp.float32) + b1[...]
    h = jnp.maximum(h, 0.0).astype(jnp.bfloat16)
    h = jnp.dot(w2[...], h, preferred_element_type=jnp.float32) + b2[...]
    h = jnp.maximum(h, 0.0).astype(jnp.bfloat16)
    h = jnp.dot(w3[...], h, preferred_element_type=jnp.float32) + b3[...]
    h = jnp.maximum(h, 0.0).astype(jnp.bfloat16)
    h = jnp.dot(w4[...], h, preferred_element_type=jnp.float32) + b4[...]
    o_ref[...] = h.astype(jnp.bfloat16)                                # bf16 [C_out, tm]


def _compress_t_kernel(x_ref, m_ref, w_ref, b_ref, o_ref):
    # Fused: valid-mask input -> Linear -> ReLU -> valid-mask output.
    # x_ref: bf16 [C_in, tm] (pooled features; invalid lanes may hold -inf),
    # m_ref: f32 [1, tm] validity mask, w_ref: bf16 [C_out, C_in], b_ref: f32 [C_out, 1].
    mask = m_ref[...] > 0.0                                            # [1, tm] bool
    x = jnp.where(mask, x_ref[...], 0)                                 # keeps bf16, kills -inf
    h = jnp.dot(w_ref[...], x, preferred_element_type=jnp.float32) + b_ref[...]
    h = jnp.maximum(h, 0.0)
    o_ref[...] = jnp.where(mask, h, 0.0)                               # f32 [C_out, tm]


def _const_spec(a):
    # Block index never changes -> Pallas re-uses the resident block (no re-DMA).
    return pl.BlockSpec(a.shape, lambda i: (0, 0))


def _round_up(x, m):
    return ((x + m - 1) // m) * m


def _num_tensorcores():
    """Best-effort count of TensorCores a 'parallel' grid axis can shard across."""
    try:
        info = pltpu.get_tpu_info()
        for attr in ("num_cores", "core_count", "num_tensorcores", "tensor_core_count"):
            v = getattr(info, attr, None)
            if isinstance(v, int) and v > 0:
                return v
    except Exception:
        pass
    try:
        kind = jax.devices()[0].device_kind.lower()
        if "v7" in kind:      # v7x: 2 TensorCores per chip
            return 2
    except Exception:
        pass
    return 1                  # v5e / v6e: single TensorCore


def _choose_tile(n, tm, num_cores=1):
    """Pick a lane-tile size (multiple of 128).

    Single-TC chips (v5e/v6e): the grid is a serial loop, so just take the largest
    tile that covers N (never shrink to force grid>=2).  Multi-TC chips (v7x):
    target a tile count that is a multiple of the core count so both TensorCores
    get equal work (an odd grid leaves one core with a ~33% tail)."""
    if n <= 128:
        return 128
    tm = max(128, min(_round_up(tm, 128), _round_up(n, 128)))
    if num_cores >= 2:
        g = pl.cdiv(n, tm)
        target = g
        if g < num_cores:
            target = num_cores
        elif g % num_cores != 0:
            target = g + (num_cores - g % num_cores)
        if target != g:
            tm = max(128, _round_up(pl.cdiv(n, target), 128))
    return tm


def pp_mlp_t(x_t, params, tm=2048, num_cores=1):
    """x_t: [F, N] f32 -> [out_dim, N] bf16, tiled over points on the lane axis."""
    f, n = x_t.shape
    tm = _choose_tile(n, tm, num_cores)
    out_dim = params[-2].shape[0]
    return pl.pallas_call(
        _pp_mlp_t_kernel,
        out_shape=jax.ShapeDtypeStruct((out_dim, n), jnp.bfloat16),
        grid=(pl.cdiv(n, tm),),
        in_specs=[pl.BlockSpec((f, tm), lambda i: (0, i))]
        + [_const_spec(p) for p in params],
        out_specs=pl.BlockSpec((out_dim, tm), lambda i: (0, i)),
        compiler_params=pltpu.CompilerParams(dimension_semantics=("parallel",)),
    )(x_t, *params)


def pallas_compress_t(x_t, valid_mask, w_t, b, tm=2048, num_cores=1):
    """Fused mask -> Linear -> ReLU -> mask.

    x_t: [F, N] bf16, valid_mask: [1, N] f32, w_t: [out, F] bf16, b: [out, 1] f32
    -> [out, N] f32; lane-dense stores."""
    f, n = x_t.shape
    out_dim = w_t.shape[0]
    tm = _choose_tile(n, tm, num_cores)
    return pl.pallas_call(
        _compress_t_kernel,
        out_shape=jax.ShapeDtypeStruct((out_dim, n), jnp.float32),
        grid=(pl.cdiv(n, tm),),
        in_specs=[
            pl.BlockSpec((f, tm), lambda i: (0, i)),
            pl.BlockSpec((1, tm), lambda i: (0, i)),
            _const_spec(w_t),
            _const_spec(b),
        ],
        out_specs=pl.BlockSpec((out_dim, tm), lambda i: (0, i)),
        compiler_params=pltpu.CompilerParams(dimension_semantics=("parallel",)),
    )(x_t, valid_mask, w_t, b)


# --------------------------------------------------------------------------------
# Parameter init (deterministic, synthetic) + eval-mode BN folding
# --------------------------------------------------------------------------------
def init_linear(key, fin, fout):
    kw, kb = jax.random.split(key)
    bound = 1.0 / float(fin) ** 0.5
    w = jax.random.uniform(kw, (fin, fout), jnp.float32, -bound, bound)
    b = jax.random.uniform(kb, (fout,), jnp.float32, -bound, bound)
    return w, b


def bn_params(dim):
    return dict(
        gamma=jnp.ones((dim,), jnp.float32),
        beta=jnp.zeros((dim,), jnp.float32),
        mean=jnp.zeros((dim,), jnp.float32),
        var=jnp.ones((dim,), jnp.float32),
    )


def _bn_scale_shift(bn, eps=1e-5):
    s = bn["gamma"] / jnp.sqrt(bn["var"] + eps)
    t = bn["beta"] - bn["mean"] * s
    return s, t


def fold_pre_bn(w, b, bn):
    # Linear(BN(x)) == x @ (s[:,None]*W) + (t @ W + b)
    s, t = _bn_scale_shift(bn)
    return w * s[:, None], b + t @ w


def fold_post_bn(w, b, bn):
    # BN(Linear(x)) == x @ (W*s[None,:]) + (b*s + t)
    s, t = _bn_scale_shift(bn)
    return w * s[None, :], b * s + t


# --------------------------------------------------------------------------------
# Model
# --------------------------------------------------------------------------------
class CylinderAsymClfV6:
    def __init__(self, key, fea_dim=9, hidden=(32, 64, 128), out_pt_fea_dim=32,
                 fea_compre=16, num_weather_classes=4, sparse_shape=(16, 16, 8),
                 fea_dim_pad=16):
        self.name = "cylinder_asym"
        self.sparse_shape = sparse_shape
        self.fea_dim = fea_dim
        self.fea_dim_pad = max(fea_dim_pad, fea_dim)
        self.num_cores = _num_tensorcores()
        h1, h2, h3 = hidden
        keys = jax.random.split(key, 6)

        # PPmodel: BN(fea) -> Lin -> BN -> ReLU -> Lin -> BN -> ReLU -> Lin -> BN -> ReLU -> Lin
        w1, b1 = init_linear(keys[0], fea_dim, h1)
        w2, b2 = init_linear(keys[1], h1, h2)
        w3, b3 = init_linear(keys[2], h2, h3)
        w4, b4 = init_linear(keys[3], h3, out_pt_fea_dim)
        w1, b1 = fold_pre_bn(w1, b1, bn_params(fea_dim))
        w1, b1 = fold_post_bn(w1, b1, bn_params(h1))
        w2, b2 = fold_post_bn(w2, b2, bn_params(h2))
        w3, b3 = fold_post_bn(w3, b3, bn_params(h3))

        # pad fea_dim 9 -> 16 with zero rows (padded x rows are zero -> identical result)
        w1 = jnp.pad(w1, ((0, self.fea_dim_pad - fea_dim), (0, 0)))

        # store transposed [C_out, C_in] bf16 weights + f32 [C_out, 1] biases
        self.pp_params = (
            w1.T.astype(jnp.bfloat16), b1.reshape(-1, 1),
            w2.T.astype(jnp.bfloat16), b2.reshape(-1, 1),
            w3.T.astype(jnp.bfloat16), b3.reshape(-1, 1),
            w4.T.astype(jnp.bfloat16), b4.reshape(-1, 1),
        )

        # feature compression (Linear + ReLU)
        wc, bc = init_linear(keys[4], out_pt_fea_dim, fea_compre)
        self.wc_t = wc.T.astype(jnp.bfloat16)
        self.bc = bc.reshape(-1, 1)

        # weather classification head (tiny; kept in plain jnp)
        ww, wb = init_linear(keys[5], fea_compre, num_weather_classes)
        self.ww, self.wb = ww, wb.reshape(1, -1)

    # ------------------------------------------------------------------
    def forward(self, train_pt_fea_ten, train_vox_ten, batch_size):
        X, Y, Z = self.sparse_shape

        # ---------------- cylinder_3d_generator ----------------
        cat_fea = jnp.concatenate(train_pt_fea_ten, axis=0)            # [N, fea_dim]
        coord_list = []
        for b, c in enumerate(train_vox_ten):
            bi = jnp.full((c.shape[0], 1), b, dtype=c.dtype)
            coord_list.append(jnp.concatenate([bi, c], axis=1))
        coords_all = jnp.concatenate(coord_list, axis=0)               # [N, 4] (b,x,y,z)

        key_flat = ((coords_all[:, 0] * X + coords_all[:, 1]) * Y
                    + coords_all[:, 2]) * Z + coords_all[:, 3]
        n = int(key_flat.shape[0])
        unq_keys, unq_inv = jnp.unique(key_flat, size=n, fill_value=-1,
                                       return_inverse=True)

        # per-point MLP (lane-dense transposed Pallas kernel); fea_dim padded 9->16,
        # f32 in (cast to bf16 in-kernel), bf16 out.
        x_t = jnp.pad(cat_fea.T, ((0, self.fea_dim_pad - self.fea_dim), (0, 0)))
        pt_fea_t = pp_mlp_t(x_t, self.pp_params, num_cores=self.num_cores)  # [32, N] bf16

        # scatter-max pooling over unique voxels (torch_scatter.scatter_max equivalent)
        # done as segment_max over the [N, C] layout — avoids the serialized
        # minor-axis XLA scatter.  Empty segments are -inf and are masked in-kernel.
        # TODO(synk): a sorted-by-voxel PrefetchScalarGridSpec Pallas segment-max fused
        # with the compression Linear would remove this XLA stage entirely.
        pt_fea = pt_fea_t.T                                             # [N, 32] bf16
        pooled = jax.ops.segment_max(pt_fea, unq_inv, num_segments=n)   # [N, 32] bf16
        counts = jax.ops.segment_sum(jnp.ones((n,), jnp.float32), unq_inv,
                                     num_segments=n)
        valid = (counts > 0) & (unq_keys >= 0)
        pooled_t = pooled.T                                             # [32, N] bf16

        # fused (mask -> Linear -> ReLU -> mask) feature compression (Pallas)
        feat_t = pallas_compress_t(pooled_t, valid.astype(jnp.float32)[None, :],
                                   self.wc_t, self.bc,
                                   num_cores=self.num_cores)            # [16, N] f32
        features_3d = feat_t.T                                          # [N, fea_compre]

        # decode unique voxel coords
        zc = unq_keys % Z
        r = unq_keys // Z
        yc = r % Y
        r = r // Y
        xc = r % X
        bc_ = r // X

        # ---------------- cylinder_3d_spconv_seg ----------------
        # TODO(synk): sparse 3D convolutions (spconv Asym_3d) have no clean Pallas
        # equivalent; voxel features are densified instead of convolved.
        C = features_3d.shape[1]
        oob_b = jnp.where(valid, bc_, batch_size)   # invalid rows -> OOB index -> dropped
        dense = jnp.zeros((batch_size, X, Y, Z, C), jnp.float32)        # channels-last scatter
        dense = dense.at[oob_b, xc, yc, zc].set(features_3d, mode="drop")
        spatial_features = jnp.transpose(dense, (0, 4, 1, 2, 3))        # [B, C, X, Y, Z]

        # weather classification head: per-batch mean pool -> tiny Linear (plain jnp)
        sums = jnp.zeros((batch_size, C), jnp.float32).at[oob_b].add(
            features_3d, mode="drop")
        cnts = jnp.zeros((batch_size,), jnp.float32).at[oob_b].add(
            valid.astype(jnp.float32), mode="drop")
        mean_fea = sums / jnp.maximum(cnts, 1.0)[:, None]
        weather_result = mean_fea @ self.ww + self.wb                   # [B, num_classes]

        return spatial_features, weather_result


# --------------------------------------------------------------------------------
if __name__ == "__main__":
    sparse_shape = (16, 16, 8)
    batch_size = 2
    fea_dim = 9
    npts = 200

    key = jax.random.PRNGKey(0)
    kf, kc = jax.random.split(key)
    train_pt_fea_ten = []
    train_vox_ten = []
    maxval = jnp.array(sparse_shape, jnp.int32)
    for b in range(batch_size):
        kf, k1 = jax.random.split(kf)
        kc, k2 = jax.random.split(kc)
        train_pt_fea_ten.append(jax.random.normal(k1, (npts, fea_dim), jnp.float32))
        train_vox_ten.append(jax.random.randint(k2, (npts, 3), 0, maxval, dtype=jnp.int32))

    model = CylinderAsymClfV6(jax.random.PRNGKey(42), fea_dim=fea_dim,
                              sparse_shape=sparse_shape)
    spatial_features, weather_result = model.forward(
        train_pt_fea_ten, train_vox_ten, batch_size)
    jax.block_until_ready((spatial_features, weather_result))

    assert spatial_features.shape == (batch_size, 16, *sparse_shape)
    assert weather_result.shape == (batch_size, 4)
    assert bool(jnp.isfinite(spatial_features).all())
    assert bool(jnp.isfinite(weather_result).all())
    print("KERNEL_OK")
</pallas_src>

<mosaic_0001>
module attributes {stable_mosaic.version = 11 : i64} {
  func.func @_pp_mlp_t_kernel(%arg0: i32, %arg1: memref<16x512xf32, #tpu.memory_space<vmem>>, %arg2: memref<32x16xbf16, #tpu.memory_space<vmem>>, %arg3: memref<32x1xf32, #tpu.memory_space<vmem>>, %arg4: memref<64x32xbf16, #tpu.memory_space<vmem>>, %arg5: memref<64x1xf32, #tpu.memory_space<vmem>>, %arg6: memref<128x64xbf16, #tpu.memory_space<vmem>>, %arg7: memref<128x1xf32, #tpu.memory_space<vmem>>, %arg8: memref<32x128xbf16, #tpu.memory_space<vmem>>, %arg9: memref<32x1xf32, #tpu.memory_space<vmem>>, %arg10: memref<32x512xbf16, #tpu.memory_space<vmem>>) attributes {dimension_semantics = [#tpu.dimension_semantics<parallel>], iteration_bounds = array<i64: 1>, scalar_prefetch = 0 : i64, scratch_operands = 0 : i64, tpu.core_type = #tpu.core_type<tc>, window_params = [{transform_indices = @transform_0, window_bounds = array<i64: 16, 512>}, {pipeline_mode = #tpu.pipeline_mode<synchronous>, transform_indices = @transform_1, window_bounds = array<i64: 32, 16>}, {pipeline_mode = #tpu.pipeline_mode<synchronous>, transform_indices = @transform_2, window_bounds = array<i64: 32, 1>}, {pipeline_mode = #tpu.pipeline_mode<synchronous>, transform_indices = @transform_3, window_bounds = array<i64: 64, 32>}, {pipeline_mode = #tpu.pipeline_mode<synchronous>, transform_indices = @transform_4, window_bounds = array<i64: 64, 1>}, {pipeline_mode = #tpu.pipeline_mode<synchronous>, transform_indices = @transform_5, window_bounds = array<i64: 128, 64>}, {pipeline_mode = #tpu.pipeline_mode<synchronous>, transform_indices = @transform_6, window_bounds = array<i64: 128, 1>}, {pipeline_mode = #tpu.pipeline_mode<synchronous>, transform_indices = @transform_7, window_bounds = array<i64: 32, 128>}, {pipeline_mode = #tpu.pipeline_mode<synchronous>, transform_indices = @transform_8, window_bounds = array<i64: 32, 1>}, {transform_indices = @transform_9, window_bounds = array<i64: 32, 512>}]} {
    %c0 = arith.constant 0 : index
    %c0_0 = arith.constant 0 : index
    %0 = vector.load %arg1[%c0, %c0_0] : memref<16x512xf32, #tpu.memory_space<vmem>>, vector<16x512xf32>
    %1 = arith.truncf %0 : vector<16x512xf32> to vector<16x512xbf16>
    %c0_1 = arith.constant 0 : index
    %c0_2 = arith.constant 0 : index
    %2 = vector.load %arg2[%c0_1, %c0_2] : memref<32x16xbf16, #tpu.memory_space<vmem>>, vector<32x16xbf16>
    %cst = arith.constant dense<0.000000e+00> : vector<32x512xf32>
    %3 = tpu.matmul %2, %1, %cst {dimension_numbers = #tpu.dot_dimension_numbers<[1], [0], [0], [1], [0, 0, 1, 1], [], []>} : vector<32x16xbf16>, vector<16x512xbf16>, vector<32x512xf32> -> vector<32x512xf32>
    %c0_3 = arith.constant 0 : index
    %c0_4 = arith.constant 0 : index
    %4 = vector.load %arg3[%c0_3, %c0_4] : memref<32x1xf32, #tpu.memory_space<vmem>>, vector<32x1xf32>
    %5 = vector.broadcast %4 : vector<32x1xf32> to vector<32x512xf32>
    %6 = arith.addf %3, %5 : vector<32x512xf32>
    %cst_5 = arith.constant 0.000000e+00 : f32
    %7 = vector.broadcast %cst_5 : f32 to vector<32x512xf32>
    %8 = arith.maximumf %6, %7 : vector<32x512xf32>
    %9 = arith.truncf %8 : vector<32x512xf32> to vector<32x512xbf16>
    %c0_6 = arith.constant 0 : index
    %c0_7 = arith.constant 0 : index
    %10 = vector.load %arg4[%c0_6, %c0_7] : memref<64x32xbf16, #tpu.memory_space<vmem>>, vector<64x32xbf16>
    %cst_8 = arith.constant dense<0.000000e+00> : vector<64x512xf32>
    %11 = tpu.matmul %10, %9, %cst_8 {dimension_numbers = #tpu.dot_dimension_numbers<[1], [0], [0], [1], [0, 0, 1, 1], [], []>} : vector<64x32xbf16>, vector<32x512xbf16>, vector<64x512xf32> -> vector<64x512xf32>
    %c0_9 = arith.constant 0 : index
    %c0_10 = arith.constant 0 : index
    %12 = vector.load %arg5[%c0_9, %c0_10] : memref<64x1xf32, #tpu.memory_space<vmem>>, vector<64x1xf32>
    %13 = vector.broadcast %12 : vector<64x1xf32> to vector<64x512xf32>
    %14 = arith.addf %11, %13 : vector<64x512xf32>
    %cst_11 = arith.constant 0.000000e+00 : f32
    %15 = vector.broadcast %cst_11 : f32 to vector<64x512xf32>
    %16 = arith.maximumf %14, %15 : vector<64x512xf32>
    %17 = arith.truncf %16 : vector<64x512xf32> to vector<64x512xbf16>
    %c0_12 = arith.constant 0 : index
    %c0_13 = arith.constant 0 : index
    %18 = vector.load %arg6[%c0_12, %c0_13] : memref<128x64xbf16, #tpu.memory_space<vmem>>, vector<128x64xbf16>
    %cst_14 = arith.constant dense<0.000000e+00> : vector<128x512xf32>
    %19 = tpu.matmul %18, %17, %cst_14 {dimension_numbers = #tpu.dot_dimension_numbers<[1], [0], [0], [1], [0, 0, 1, 1], [], []>} : vector<128x64xbf16>, vector<64x512xbf16>, vector<128x512xf32> -> vector<128x512xf32>
    %c0_15 = arith.constant 0 : index
    %c0_16 = arith.constant 0 : index
    %20 = vector.load %arg7[%c0_15, %c0_16] : memref<128x1xf32, #tpu.memory_space<vmem>>, vector<128x1xf32>
    %21 = vector.broadcast %20 : vector<128x1xf32> to vector<128x512xf32>
    %22 = arith.addf %19, %21 : vector<128x512xf32>
    %cst_17 = arith.constant 0.000000e+00 : f32
    %23 = vector.broadcast %cst_17 : f32 to vector<128x512xf32>
    %24 = arith.maximumf %22, %23 : vector<128x512xf32>
    %25 = arith.truncf %24 : vector<128x512xf32> to vector<128x512xbf16>
    %c0_18 = arith.constant 0 : index
    %c0_19 = arith.constant 0 : index
    %26 = vector.load %arg8[%c0_18, %c0_19] : memref<32x128xbf16, #tpu.memory_space<vmem>>, vector<32x128xbf16>
    %cst_20 = arith.constant dense<0.000000e+00> : vector<32x512xf32>
    %27 = tpu.matmul %26, %25, %cst_20 {dimension_numbers = #tpu.dot_dimension_numbers<[1], [0], [0], [1], [0, 0, 1, 1], [], []>} : vector<32x128xbf16>, vector<128x512xbf16>, vector<32x512xf32> -> vector<32x512xf32>
    %c0_21 = arith.constant 0 : index
    %c0_22 = arith.constant 0 : index
    %28 = vector.load %arg9[%c0_21, %c0_22] : memref<32x1xf32, #tpu.memory_space<vmem>>, vector<32x1xf32>
    %29 = vector.broadcast %28 : vector<32x1xf32> to vector<32x512xf32>
    %30 = arith.addf %27, %29 : vector<32x512xf32>
    %31 = arith.truncf %30 : vector<32x512xf32> to vector<32x512xbf16>
    %c0_23 = arith.constant 0 : index
    %c0_24 = arith.constant 0 : index
    %32 = vector.load %arg10[%c0_23, %c0_24] : memref<32x512xbf16, #tpu.memory_space<vmem>>, vector<32x512xbf16>
    tpu.vector_store %arg10[%c0_23, %c0_24], %31 {strides = array<i32>} : memref<32x512xbf16, #tpu.memory_space<vmem>>, vector<32x512xbf16>,
    return
  }
  func.func @transform_0(%arg0: i32) -> (i32, i32) {
    %c0_i32 = arith.constant 0 : i32
    %c0_i32_0 = arith.constant 0 : i32
    return %c0_i32, %arg0 : i32, i32
  }
  func.func @transform_1(%arg0: i32) -> (i32, i32) {
    %c0_i32 = arith.constant 0 : i32
    %c0_i32_0 = arith.constant 0 : i32
    %c0_i32_1 = arith.constant 0 : i32
    return %c0_i32, %c0_i32_0 : i32, i32
  }
  func.func @transform_2(%arg0: i32) -> (i32, i32) {
    %c0_i32 = arith.constant 0 : i32
    %c0_i32_0 = arith.constant 0 : i32
    %c0_i32_1 = arith.constant 0 : i32
    return %c0_i32, %c0_i32_0 : i32, i32
  }
  func.func @transform_3(%arg0: i32) -> (i32, i32) {
    %c0_i32 = arith.constant 0 : i32
    %c0_i32_0 = arith.constant 0 : i32
    %c0_i32_1 = arith.constant 0 : i32
    return %c0_i32, %c0_i32_0 : i32, i32
  }
  func.func @transform_4(%arg0: i32) -> (i32, i32) {
    %c0_i32 = arith.constant 0 : i32
    %c0_i32_0 = arith.constant 0 : i32
    %c0_i32_1 = arith.constant 0 : i32
    return %c0_i32, %c0_i32_0 : i32, i32
  }
  func.func @transform_5(%arg0: i32) -> (i32, i32) {
    %c0_i32 = arith.constant 0 : i32
    %c0_i32_0 = arith.constant 0 : i32
    %c0_i32_1 = arith.constant 0 : i32
    return %c0_i32, %c0_i32_0 : i32, i32
  }
  func.func @transform_6(%arg0: i32) -> (i32, i32) {
    %c0_i32 = arith.constant 0 : i32
    %c0_i32_0 = arith.constant 0 : i32
    %c0_i32_1 = arith.constant 0 : i32
    return %c0_i32, %c0_i32_0 : i32, i32
  }
  func.func @transform_7(%arg0: i32) -> (i32, i32) {
    %c0_i32 = arith.constant 0 : i32
    %c0_i32_0 = arith.constant 0 : i32
    %c0_i32_1 = arith.constant 0 : i32
    return %c0_i32, %c0_i32_0 : i32, i32
  }
  func.func @transform_8(%arg0: i32) -> (i32, i32) {
    %c0_i32 = arith.constant 0 : i32
    %c0_i32_0 = arith.constant 0 : i32
    %c0_i32_1 = arith.constant 0 : i32
    return %c0_i32, %c0_i32_0 : i32, i32
  }
  func.func @transform_9(%arg0: i32) -> (i32, i32) {
    %c0_i32 = arith.constant 0 : i32
    %c0_i32_0 = arith.constant 0 : i32
    return %c0_i32, %arg0 : i32, i32
  }
}

</mosaic_0001>

<bundles_post_ra>
// kernel: tpu_custom_call.1
= control target key start
LH: loop header
LB: loop body
LE: loop exit
PB: predicated region body
PF: predicated region fallthrough
CT: control target
= control target key end

     0   :  { %v1880_v7 = vmov 0   ;;  %vm84_vm0 = vcmask 130048   ;;  %s1870_s0 = inlined_call_operand.vmem [shape: f32[16,400], index: 0, kind: input, shape index: {}]   ;;  %s1871_s1 = inlined_call_operand.vmem [shape: bf16[32,16], index: 1, kind: input, shape index: {}]   ;;  %s1872_s2 = inlined_call_operand.vmem [shape: f32[32,1], index: 2, kind: input, shape index: {}]   ;;  %s1873_s3 = inlined_call_operand.vmem [shape: bf16[64,32], index: 3, kind: input, shape index: {}]   ;;  %s1874_s4 = inlined_call_operand.vmem [shape: f32[64,1], index: 4, kind: input, shape index: {}]   ;;  %s1875_s5 = inlined_call_operand.vmem [shape: bf16[128,64], index: 5, kind: input, shape index: {}]   ;;  %s1876_s6 = inlined_call_operand.vmem [shape: f32[128,1], index: 6, kind: input, shape index: {}]   ;;  %s1877_s7 = inlined_call_operand.vmem [shape: bf16[32,128], index: 7, kind: input, shape index: {}]   ;;  %s1878_s8 = inlined_call_operand.vmem [shape: f32[32,1], index: 8, kind: input, shape index: {}]   ;;  %s1879_s9 = inlined_call_operand.hbm [shape: bf16[32,400], index: 9, kind: output, shape index: {}]  }
   0x1   :  { %v35_v0 = vld [vmem:[%s1870_s0 + $0x8] sm:$0xff]  ;;  %v37_v2 = vld [vmem:[%s1870_s0 + $0x18] sm:$0xff]  ;;  %v34_v5 = vld [vmem:[%s1870_s0] sm:$0xff]  ;;  %123 = vmatprep.mubr.bf16.mxu0 %v1880_v7  ;;  %176 = vmatprep.mubr.bf16.mxu1 %v1880_v7 }
   0x2   :  { %v39_v1 = vld [vmem:[%s1870_s0 + $0x28] sm:$0xff]  ;;  %v41_v4 = vld [vmem:[%s1870_s0 + $0x38] sm:$0xff]  ;;  %v38_v6 = vld [vmem:[%s1870_s0 + $0x20] sm:$0xff]  ;;  %1285 = vset.pattern.permute.xlu0 %v1880_v7  ;;  %1286 = vset.pattern.permute.xlu1 %v1880_v7 }
   0x3   :  { %v43_v3 = vpack.c.bf16 %v39_v1, %v35_v0  ;;  %v45_v8 = vpack.c.bf16 %v41_v4, %v37_v2  ;;  %v42_v9 = vpack.c.bf16 %v38_v6, %v34_v5  ;;  %v36_v10 = vld [vmem:[%s1870_s0 + $0x10] sm:$0xff]  ;;  %v1287_v13 = vld [vmem:[%s1871_s1] sm:$0xff]   ;;  %v53_v16 = vld [vmem:[%s1872_s2 + $0x18] sm:$0xff] }
   0x4   :  { %v40_v11 = vld [vmem:[%s1870_s0 + $0x30] sm:$0xff]  ;;  %v50_v15 = vld [vmem:[%s1872_s2] sm:$0xff]  ;;  %v51_v17 = vld [vmem:[%s1872_s2 + $0x8] sm:$0xff] }
   0x5   :  { %105 = vmatprep.subr.bf16.mxu0 %v43_v3  ;;  %v44_v12 = vpack.c.bf16 %v40_v11, %v36_v10  ;;  %158 = vmatprep.subr.bf16.mxu1 %v45_v8  ;;  %v52_v14 = vld [vmem:[%s1872_s2 + $0x10] sm:$0xff]  ;;  %v1288_v19 = vld [vmem:[%s1871_s1 + $0x8] sm:$0xff]   ;;  %v236_v20 = vld [vmem:[%s1874_s4 + $0x38] sm:$0xff] }
   0x6   :  { %106 = vmatpush1.bf16.msra.mxu0 %v42_v9  ;;  %66 = vperm.xlu0 %1285, %v52_v14   ;;  %v235_v18 = vld [vmem:[%s1874_s4 + $0x30] sm:$0xff]  ;;  %v233_v21 = vld [vmem:[%s1874_s4 + $0x20] sm:$0xff]  ;;  %v234_v22 = vld [vmem:[%s1874_s4 + $0x28] sm:$0xff] }
   0x7   :  { %159 = vmatpush1.bf16.msra.mxu1 %v44_v12  ;;  %56 = vperm.xlu1 %1286, %v50_v15   ;;  %v231_v23 = vld [vmem:[%s1874_s4 + $0x10] sm:$0xff]  ;;  %v232_v24 = vld [vmem:[%s1874_s4 + $0x18] sm:$0xff]  ;;  %v229_v25 = vld [vmem:[%s1874_s4] sm:$0xff] }
   0x8   :  { %v230_v26 = vld [vmem:[%s1874_s4 + $0x8] sm:$0xff] }
   0x9   :  { %1223 = vmatmul.mubr.msk.bf16.vlgmr.msra.gmra.mxu0 %vm84_vm0, %v1287_v13 }
   0xa   :  { %1225 = vmatmul.mubr.msk.bf16.vlgmr.msra.gmra.mxu1 %vm84_vm0, %v1287_v13  ;;  %133 = vmatprep.mubr.bf16.mxu0 %v1880_v7 }
   0xb   :  { %186 = vmatprep.mubr.bf16.mxu1 %v1880_v7  ;;  %71 = vperm.xlu0 %1285, %v53_v16  }
   0xc   :  { %61 = vperm.xlu1 %1286, %v51_v17  }
   0xf   :  { %269 = vperm.xlu0 %1285, %v235_v18  }
  0x10   :  { %274 = vperm.xlu1 %1286, %v236_v20  }
  0x11   :  { %1224 = vmatmul.mubr.msk.bf16.gmra.mxu0 %vm84_vm0, %v1288_v19 }
  0x12   :  { %1226 = vmatmul.mubr.msk.bf16.gmra.mxu1 %vm84_vm0, %v1288_v19  ;;  %342 = vmatprep.mubr.bf16.mxu0 %v1880_v7 }
  0x13   :  { %259 = vperm.xlu0 %1285, %v233_v21   ;;  %415 = vmatprep.mubr.bf16.mxu1 %v1880_v7 }
  0x14   :  { %264 = vperm.xlu1 %1286, %v234_v22  }
  0x17   :  { %249 = vperm.xlu0 %1285, %v231_v23  }
  0x18   :  { %254 = vperm.xlu1 %1286, %v232_v24  }
  0x19   :  { %14 = vsyncpa [#allocation3], 0  ;;  %v534_v27 = vld [vmem:[%s1876_s6 + $0x70] sm:$0xff]  ;;  %v535_v28 = vld [vmem:[%s1876_s6 + $0x78] sm:$0xff]  ;;  %vm297_vm1 = vcmask 261120   ;;  %vm656_vm2 = vcmask 523264  }
  0x1a   :  { %v532_v29 = vld [vmem:[%s1876_s6 + $0x60] sm:$0xff]  ;;  %v533_v30 = vld [vmem:[%s1876_s6 + $0x68] sm:$0xff]  ;;  %v530_v31 = vld [vmem:[%s1876_s6 + $0x50] sm:$0xff] }
  0x1b   :  { %239 = vperm.xlu0 %1285, %v229_v25   ;;  %v531_v32 = vld [vmem:[%s1876_s6 + $0x58] sm:$0xff]  ;;  %v528_v33 = vld [vmem:[%s1876_s6 + $0x40] sm:$0xff]  ;;  %v529_v34 = vld [vmem:[%s1876_s6 + $0x48] sm:$0xff] }
  0x1c   :  { %244 = vperm.xlu1 %1286, %v230_v26   ;;  %v526_v35 = vld [vmem:[%s1876_s6 + $0x30] sm:$0xff]  ;;  %v527_v36 = vld [vmem:[%s1876_s6 + $0x38] sm:$0xff]  ;;  %v524_v37 = vld [vmem:[%s1876_s6 + $0x20] sm:$0xff] }
  0x1d   :  { %v525_v38 = vld [vmem:[%s1876_s6 + $0x28] sm:$0xff]  ;;  %v522_v39 = vld [vmem:[%s1876_s6 + $0x10] sm:$0xff]  ;;  %v523_v40 = vld [vmem:[%s1876_s6 + $0x18] sm:$0xff] }
  0x1e   :  { %v520_v41 = vld [vmem:[%s1876_s6] sm:$0xff]  ;;  %v521_v42 = vld [vmem:[%s1876_s6 + $0x8] sm:$0xff]  ;;  %v1009_v45 = vld [vmem:[%s1878_s8 + $0x10] sm:$0xff] }
  0x1f   :  { %608 = vperm.xlu0 %1285, %v534_v27   ;;  %v1007_v43 = vld [vmem:[%s1878_s8] sm:$0xff]  ;;  %v1008_v44 = vld [vmem:[%s1878_s8 + $0x8] sm:$0xff]  ;;  %v1010_v46 = vld [vmem:[%s1878_s8 + $0x18] sm:$0xff] }
  0x20   :  { %613 = vperm.xlu1 %1286, %v535_v28  }
  0x23   :  { %598 = vperm.xlu0 %1285, %v532_v29  }
  0x24   :  { %603 = vperm.xlu1 %1286, %v533_v30  }
  0x27   :  { %588 = vperm.xlu0 %1285, %v530_v31  }
  0x28   :  { %593 = vperm.xlu1 %1286, %v531_v32  }
  0x2b   :  { %578 = vperm.xlu0 %1285, %v528_v33  }
  0x2c   :  { %583 = vperm.xlu1 %1286, %v529_v34  }
  0x2f   :  { %568 = vperm.xlu0 %1285, %v526_v35  }
  0x30   :  { %573 = vperm.xlu1 %1286, %v527_v36  }
  0x33   :  { %558 = vperm.xlu0 %1285, %v524_v37  }
  0x34   :  { %563 = vperm.xlu1 %1286, %v525_v38  }
  0x37   :  { %548 = vperm.xlu0 %1285, %v522_v39  }
  0x38   :  { %553 = vperm.xlu1 %1286, %v523_v40  }
  0x3b   :  { %538 = vperm.xlu0 %1285, %v520_v41  }
  0x3c   :  { %543 = vperm.xlu1 %1286, %v521_v42  }
  0x3f   :  { %1013 = vperm.xlu0 %1285, %v1007_v43  }
  0x40   :  { %1018 = vperm.xlu1 %1286, %v1008_v44   ;;  %v1289_v44 = vld [vmem:[%s1873_s3] sm:$0xff]  }
  0x43   :  { %1023 = vperm.xlu0 %1285, %v1009_v45   ;;  %v1290_v45 = vld [vmem:[%s1873_s3 + $0x8] sm:$0xff]  }
  0x44   :  { %1028 = vperm.xlu1 %1286, %v1010_v46   ;;  %v1291_v46 = vld [vmem:[%s1873_s3 + $0x10] sm:$0xff]  }
  0x81   :  { %v67_v52 = vpop.permute.xlu0 %66 }
  0x82   :  { %v57_v54 = vpop.permute.xlu1 %56 }
  0x86   :  { %v72_v60 = vpop.permute.xlu0 %71 }
  0x87   :  { %v62_v62 = vpop.permute.xlu1 %61 }
  0xc9   :  { %v125_v47 = vpop.f32.mrf.mxu0 }
  0xca   :  { %v178_v48 = vpop.f32.mrf.mxu1  ;;  %v126_v0 = vadd.f32 %v125_v47, %v57_v54  ;;  %v1292_v47 = vld [vmem:[%s1873_s3 + $0x18] sm:$0xff]  }
  0xcb   :  { %v127_v49 = vpop.f32.mrf.mxu0  ;;  %v179_v28 = vadd.f32 %v178_v48, %v57_v54 }
  0xcc   :  { %v180_v50 = vpop.f32.mrf.mxu1  ;;  %v128_v11 = vadd.f32 %v127_v49, %v57_v54  ;;  %v197_v39 = vmax.f32 %v126_v0, 0.0 }
  0xcd   :  { %v129_v51 = vpop.f32.mrf.mxu0  ;;  %v181_v12 = vadd.f32 %v180_v50, %v57_v54  ;;  %v199_v41 = vmax.f32 %v179_v28, 0.0 }
  0xce   :  { %v182_v53 = vpop.f32.mrf.mxu1  ;;  %v130_v16 = vadd.f32 %v129_v51, %v62_v62  ;;  %v198_v29 = vmax.f32 %v128_v11, 0.0 }
  0xcf   :  { %v131_v55 = vpop.f32.mrf.mxu0  ;;  %v183_v17 = vadd.f32 %v182_v53, %v62_v62  ;;  %v200_v32 = vmax.f32 %v181_v12, 0.0 }
  0xd0   :  { %v184_v56 = vpop.f32.mrf.mxu1  ;;  %v132_v1 = vadd.f32 %v131_v55, %v62_v62  ;;  %v201_v33 = vmax.f32 %v130_v16, 0.0  ;;  %v270_v55 = vpop.permute.xlu0 %269 }
  0xd1   :  { %v135_v57 = vpop.f32.mrf.mxu0  ;;  %v185_v5 = vadd.f32 %v184_v56, %v62_v62  ;;  %v203_v36 = vmax.f32 %v183_v17, 0.0 }
  0xd2   :  { %v188_v58 = vpop.f32.mrf.mxu1  ;;  %v136_v6 = vadd.f32 %v135_v57, %v67_v52  ;;  %v202_v20 = vmax.f32 %v132_v1, 0.0  ;;  %v213_v42 = vpack.c.bf16 %v201_v33, %v197_v39  ;;  %v275_v57 = vpop.permute.xlu1 %274 }
  0xd3   :  { %v137_v59 = vpop.f32.mrf.mxu0  ;;  %v189_v13 = vadd.f32 %v188_v58, %v67_v52  ;;  %v204_v24 = vmax.f32 %v185_v5, 0.0  ;;  %v215_v43 = vpack.c.bf16 %v203_v36, %v199_v41 }
  0xd4   :  { %v190_v61 = vpop.f32.mrf.mxu1  ;;  %v138_v2 = vadd.f32 %v137_v59, %v67_v52  ;;  %v205_v25 = vmax.f32 %v136_v6, 0.0  ;;  %v214_v37 = vpack.c.bf16 %v202_v20, %v198_v29 }
  0xd5   :  { %v139_v63 = vpop.f32.mrf.mxu0  ;;  %v191_v8 = vadd.f32 %v190_v61, %v67_v52  ;;  %v207_v30 = vmax.f32 %v189_v13, 0.0  ;;  %v216_v40 = vpack.c.bf16 %v204_v24, %v200_v32 }
  0xd6   :  { %v140_v3 = vadd.f32 %v139_v63, %v72_v60  ;;  %v192_v4 = vpop.f32.mrf.mxu1  ;;  %v206_v21 = vmax.f32 %v138_v2, 0.0  ;;  %v260_v63 = vpop.permute.xlu0 %259 }
  0xd7   :  { %v193_v9 = vadd.f32 %v192_v4, %v72_v60  ;;  %v141_v10 = vpop.f32.mrf.mxu0  ;;  %v208_v26 = vmax.f32 %v191_v8, 0.0  ;;  %v265_v1 = vpop.permute.xlu1 %264 }
  0xd8   :  { %v142_v14 = vadd.f32 %v141_v10, %v72_v60  ;;  %v194_v15 = vpop.f32.mrf.mxu1  ;;  %v209_v18 = vmax.f32 %v140_v3, 0.0 }
  0xd9   :  { %v195_v19 = vadd.f32 %v194_v15, %v72_v60  ;;  %v211_v22 = vmax.f32 %v193_v9, 0.0 }
  0xda   :  { %v210_v23 = vmax.f32 %v142_v14, 0.0  ;;  %v217_v34 = vpack.c.bf16 %v209_v18, %v205_v25  ;;  %v1557_v8 = vpop.permute.xlu0 %249 }
  0xdb   :  { %v212_v27 = vmax.f32 %v195_v19, 0.0  ;;  %v219_v38 = vpack.c.bf16 %v211_v22, %v207_v30  ;;  %v255_v10 = vpop.permute.xlu1 %254 }
  0xdc   :  { %v218_v31 = vpack.c.bf16 %v210_v23, %v206_v21 }
  0xdd   :  { %v220_v35 = vpack.c.bf16 %v212_v27, %v208_v26 }
  0xde   :  { %322 = vmatprep.subr.bf16.mxu0 %v218_v31  ;;  %v1559_v16 = vpop.permute.xlu0 %239 }
  0xdf   :  { %395 = vmatprep.subr.bf16.mxu1 %v220_v35  ;;  %323 = vmatpush1.bf16.msra.mxu0 %v217_v34  ;;  %v1561_v18 = vpop.permute.xlu1 %244 }
  0xe0   :  { %396 = vmatpush1.bf16.msra.mxu1 %v219_v38  ;;  %324 = vmatprep.subr.bf16.mxu0 %v214_v37 }
  0xe1   :  { %397 = vmatprep.subr.bf16.mxu1 %v216_v40 }
  0xe3   :  { %325 = vmatpush1.bf16.msra.mxu0 %v213_v42 }
  0xe4   :  { %398 = vmatpush1.bf16.msra.mxu1 %v215_v43 }
  0xe6   :  { %1231 = vmatmul.mubr.msk.bf16.vlgmr.msra.gmra.mxu0 %vm297_vm1, %v1289_v44 }
  0xe7   :  { %1235 = vmatmul.mubr.msk.bf16.vlgmr.msra.gmra.mxu1 %vm297_vm1, %v1289_v44  ;;  %352 = vmatprep.mubr.bf16.mxu0 %v1880_v7 }
  0xe8   :  { %425 = vmatprep.mubr.bf16.mxu1 %v1880_v7 }
  0xee   :  { %1232 = vmatmul.mubr.msk.bf16.gmra.mxu0 %vm297_vm1, %v1290_v45 }
  0xef   :  { %1236 = vmatmul.mubr.msk.bf16.gmra.mxu1 %vm297_vm1, %v1290_v45  ;;  %362 = vmatprep.mubr.bf16.mxu0 %v1880_v7 }
  0xf0   :  { %435 = vmatprep.mubr.bf16.mxu1 %v1880_v7 }
  0xf6   :  { %1233 = vmatmul.mubr.msk.bf16.gmra.mxu0 %vm297_vm1, %v1291_v46 }
  0xf7   :  { %1237 = vmatmul.mubr.msk.bf16.gmra.mxu1 %vm297_vm1, %v1291_v46  ;;  %372 = vmatprep.mubr.bf16.mxu0 %v1880_v7 }
  0xf8   :  { %445 = vmatprep.mubr.bf16.mxu1 %v1880_v7 }
  0xfe   :  { %1234 = vmatmul.mubr.msk.bf16.gmra.mxu0 %vm297_vm1, %v1292_v47 }
  0xff   :  { %1238 = vmatmul.mubr.msk.bf16.gmra.mxu1 %vm297_vm1, %v1292_v47  ;;  %713 = vmatprep.mubr.bf16.mxu0 %v1880_v7 }
 0x100   :  { %826 = vmatprep.mubr.bf16.mxu1 %v1880_v7 }
 0x1a6   :  { %v1545_v48 = vpop.f32.mrf.mxu0 }
 0x1a7   :  { %v1547_v49 = vpop.f32.mrf.mxu1 }
 0x1a8   :  { %v346_v50 = vpop.f32.mrf.mxu0 }
 0x1a9   :  { %v419_v51 = vpop.f32.mrf.mxu1  ;;  %v1564_v19 = vadd.f32 %v346_v50, %v1559_v16 }
 0x1aa   :  { %v1549_v52 = vpop.f32.mrf.mxu0  ;;  %v1567_v20 = vadd.f32 %v419_v51, %v1559_v16 }
 0x1ab   :  { %v1551_v53 = vpop.f32.mrf.mxu1 }
 0x1ac   :  { %v350_v54 = vpop.f32.mrf.mxu0 }
 0x1ad   :  { %v423_v56 = vpop.f32.mrf.mxu1  ;;  %v1570_v22 = vadd.f32 %v350_v54, %v1561_v18 }
 0x1ae   :  { %v1553_v58 = vpop.f32.mrf.mxu0  ;;  %v1573_v23 = vadd.f32 %v423_v56, %v1561_v18 }
 0x1af   :  { %v1555_v59 = vpop.f32.mrf.mxu1 }
 0x1b0   :  { %v356_v60 = vpop.f32.mrf.mxu0 }
 0x1b1   :  { %v429_v61 = vpop.f32.mrf.mxu1  ;;  %v1576_v24 = vadd.f32 %v356_v60, %v1557_v8 }
 0x1b2   :  { %v358_v62 = vpop.f32.mrf.mxu0  ;;  %v1579_v25 = vadd.f32 %v429_v61, %v1557_v8 }
 0x1b3   :  { %v431_v0 = vpop.f32.mrf.mxu1  ;;  %v1581_v27 = vadd.f32 %v358_v62, %v255_v10 }
 0x1b4   :  { %v360_v2 = vpop.f32.mrf.mxu0  ;;  %v1583_v28 = vadd.f32 %v431_v0, %v255_v10 }
 0x1b5   :  { %v433_v3 = vpop.f32.mrf.mxu1  ;;  %v1585_v29 = vadd.f32 %v360_v2, %v255_v10 }
 0x1b6   :  { %v364_v4 = vpop.f32.mrf.mxu0  ;;  %v1587_v30 = vadd.f32 %v433_v3, %v255_v10 }
 0x1b7   :  { %v437_v5 = vpop.f32.mrf.mxu1  ;;  %v365_v32 = vadd.f32 %v364_v4, %v260_v63 }
 0x1b8   :  { %v366_v6 = vpop.f32.mrf.mxu0  ;;  %v438_v10 = vadd.f32 %v437_v5, %v260_v63  ;;  %v349_v5 = vadd.f32 %v1549_v52, %v1561_v18  ;;  %v470_v52 = vmax.f32 %v1583_v28, 0.0 }
 0x1b9   :  { %v439_v9 = vpop.f32.mrf.mxu1  ;;  %v367_v42 = vadd.f32 %v366_v6, %v260_v63 }
 0x1ba   :  { %v368_v11 = vpop.f32.mrf.mxu0  ;;  %v440_v43 = vadd.f32 %v439_v9, %v260_v63 }
 0x1bb   :  { %v441_v12 = vpop.f32.mrf.mxu1  ;;  %v369_v47 = vadd.f32 %v368_v11, %v265_v1 }
 0x1bc   :  { %v370_v13 = vpop.f32.mrf.mxu0  ;;  %v442_v50 = vadd.f32 %v441_v12, %v265_v1  ;;  %v475_v9 = vmax.f32 %v440_v43, 0.0 }
 0x1bd   :  { %v443_v14 = vpop.f32.mrf.mxu1  ;;  %v371_v33 = vadd.f32 %v370_v13, %v265_v1  ;;  %v473_v13 = vmax.f32 %v367_v42, 0.0 }
 0x1be   :  { %v374_v15 = vpop.f32.mrf.mxu0  ;;  %v444_v37 = vadd.f32 %v443_v14, %v265_v1  ;;  %v469_v1 = vmax.f32 %v1585_v29, 0.0  ;;  %v478_v11 = vmax.f32 %v442_v50, 0.0  ;;  %v465_v29 = vmax.f32 %v1576_v24, 0.0  ;;  %v1299_v50 = vld [vmem:[%s1875_s5 + $0x30] sm:$0xff]  }
 0x1bf   :  { %v447_v17 = vpop.f32.mrf.mxu1  ;;  %v375_v38 = vadd.f32 %v374_v15, %v270_v55  ;;  %v477_v56 = vmax.f32 %v371_v33, 0.0  ;;  %v428_v33 = vadd.f32 %v1555_v59, %v1557_v8  ;;  %v463_v24 = vmax.f32 %v1573_v23, 0.0 }
 0x1c0   :  { %v376_v21 = vpop.f32.mrf.mxu0  ;;  %v448_v44 = vadd.f32 %v447_v17, %v270_v55  ;;  %v479_v0 = vmax.f32 %v444_v37, 0.0  ;;  %v493_v37 = vpack.c.bf16 %v469_v1, %v465_v29 }
 0x1c1   :  { %v449_v26 = vpop.f32.mrf.mxu1  ;;  %v377_v34 = vadd.f32 %v376_v21, %v270_v55  ;;  %v480_v2 = vmax.f32 %v375_v38, 0.0  ;;  %v355_v21 = vadd.f32 %v1553_v58, %v1557_v8  ;;  %v422_v58 = vadd.f32 %v1551_v53, %v1561_v18 }
 0x1c2   :  { %v378_v31 = vpop.f32.mrf.mxu0  ;;  %v450_v39 = vadd.f32 %v449_v26, %v270_v55  ;;  %v482_v14 = vmax.f32 %v448_v44, 0.0  ;;  %v476_v55 = vmax.f32 %v369_v47, 0.0  ;;  %v471_v26 = vmax.f32 %v1587_v30, 0.0  ;;  %v1295_v44 = vld [vmem:[%s1875_s5 + $0x10] sm:$0xff]   ;;  %v1298_v47 = vld [vmem:[%s1875_s5 + $0x28] sm:$0xff]  }
 0x1c3   :  { %v379_v35 = vadd.f32 %v378_v31, %v275_v57  ;;  %v451_v36 = vpop.f32.mrf.mxu1  ;;  %v481_v60 = vmax.f32 %v377_v34, 0.0  ;;  %v472_v31 = vmax.f32 %v365_v32, 0.0  ;;  %v499_v63 = vpack.c.bf16 %v479_v0, %v475_v9 }
 0x1c4   :  { %v452_v40 = vadd.f32 %v451_v36, %v275_v57  ;;  %v380_v41 = vpop.f32.mrf.mxu0  ;;  %v483_v3 = vmax.f32 %v450_v39, 0.0  ;;  %v474_v34 = vmax.f32 %v438_v10, 0.0  ;;  %v467_v30 = vmax.f32 %v1579_v25, 0.0 }
 0x1c5   :  { %v381_v45 = vadd.f32 %v380_v41, %v275_v57  ;;  %v453_v46 = vpop.f32.mrf.mxu1  ;;  %v484_v51 = vmax.f32 %v379_v35, 0.0  ;;  %v468_v32 = vmax.f32 %v1581_v27, 0.0  ;;  %v496_v35 = vpack.c.bf16 %v476_v55, %v472_v31 }
 0x1c6   :  { %v454_v54 = vadd.f32 %v453_v46, %v275_v57  ;;  %v486_v61 = vmax.f32 %v452_v40, 0.0  ;;  %v497_v57 = vpack.c.bf16 %v477_v56, %v473_v13  ;;  %v461_v36 = vmax.f32 %v1570_v22, 0.0  ;;  %v1297_v46 = vld [vmem:[%s1875_s5 + $0x20] sm:$0xff]   ;;  %v1669_v56 = vpop.permute.xlu1 %613 }
 0x1c7   :  { %v485_v62 = vmax.f32 %v381_v45, 0.0  ;;  %v500_v15 = vpack.c.bf16 %v484_v51, %v480_v2  ;;  %v498_v59 = vpack.c.bf16 %v478_v11, %v474_v34  ;;  %v345_v8 = vadd.f32 %v1545_v48, %v1559_v16  ;;  %v1296_v45 = vld [vmem:[%s1875_s5 + $0x18] sm:$0xff]  }
 0x1c8   :  { %v487_v4 = vmax.f32 %v454_v54, 0.0  ;;  %v502_v12 = vpack.c.bf16 %v486_v61, %v482_v14  ;;  %v464_v38 = vmax.f32 %v355_v21, 0.0  ;;  %v495_v39 = vpack.c.bf16 %v471_v26, %v467_v30  ;;  %v1300_v51 = vld [vmem:[%s1875_s5 + $0x38] sm:$0xff]   ;;  %v1667_v54 = vpop.permute.xlu0 %608 }
 0x1c9   :  { %v501_v6 = vpack.c.bf16 %v485_v62, %v481_v60  ;;  %v418_v53 = vadd.f32 %v1547_v49, %v1559_v16  ;;  %v457_v18 = vmax.f32 %v1564_v19, 0.0  ;;  %v466_v25 = vmax.f32 %v428_v33, 0.0  ;;  %v1293_v19 = vld [vmem:[%s1875_s5] sm:$0xff]  }
 0x1ca   :  { %v503_v17 = vpack.c.bf16 %v487_v4, %v483_v3  ;;  %v459_v22 = vmax.f32 %v1567_v20, 0.0  ;;  %v460_v27 = vmax.f32 %v349_v5, 0.0  ;;  %v492_v28 = vpack.c.bf16 %v468_v32, %v464_v38  ;;  %v1294_v20 = vld [vmem:[%s1875_s5 + $0x8] sm:$0xff]   ;;  %v1673_v61 = vpop.permute.xlu1 %603 }
 0x1cb   :  { %689 = vmatprep.subr.bf16.mxu0 %v501_v6  ;;  %v462_v40 = vmax.f32 %v422_v58, 0.0  ;;  %v489_v48 = vpack.c.bf16 %v461_v36, %v457_v18  ;;  %v494_v41 = vpack.c.bf16 %v470_v52, %v466_v25  ;;  %v456_v23 = vmax.f32 %v345_v8, 0.0 }
 0x1cc   :  { %802 = vmatprep.subr.bf16.mxu1 %v503_v17  ;;  %690 = vmatpush1.bf16.msra.mxu0 %v500_v15  ;;  %v491_v42 = vpack.c.bf16 %v463_v24, %v459_v22  ;;  %v458_v43 = vmax.f32 %v418_v53, 0.0  ;;  %v1671_v60 = vpop.permute.xlu0 %598 }
 0x1cd   :  { %803 = vmatpush1.bf16.msra.mxu1 %v502_v12  ;;  %691 = vmatprep.subr.bf16.mxu0 %v497_v57  ;;  %v488_v49 = vpack.c.bf16 %v460_v27, %v456_v23 }
 0x1ce   :  { %804 = vmatprep.subr.bf16.mxu1 %v499_v63  ;;  %v490_v16 = vpack.c.bf16 %v462_v40, %v458_v43  ;;  %v1677_v0 = vpop.permute.xlu1 %593 }
 0x1d0   :  { %692 = vmatpush1.bf16.msra.mxu0 %v496_v35  ;;  %v1675_v62 = vpop.permute.xlu0 %588 }
 0x1d1   :  { %805 = vmatpush1.bf16.msra.mxu1 %v498_v59  ;;  %693 = vmatprep.subr.bf16.mxu0 %v493_v37 }
 0x1d2   :  { %806 = vmatprep.subr.bf16.mxu1 %v495_v39  ;;  %v1681_v3 = vpop.permute.xlu1 %583 }
 0x1d4   :  { %694 = vmatpush1.bf16.msra.mxu0 %v492_v28  ;;  %v1679_v2 = vpop.permute.xlu0 %578 }
 0x1d5   :  { %807 = vmatpush1.bf16.msra.mxu1 %v494_v41  ;;  %695 = vmatprep.subr.bf16.mxu0 %v489_v48 }
 0x1d6   :  { %808 = vmatprep.subr.bf16.mxu1 %v491_v42  ;;  %v1685_v10 = vpop.permute.xlu1 %573 }
 0x1d8   :  { %696 = vmatpush1.bf16.msra.mxu0 %v488_v49  ;;  %v1683_v4 = vpop.permute.xlu0 %568 }
 0x1d9   :  { %809 = vmatpush1.bf16.msra.mxu1 %v490_v16 }
 0x1da   :  { %v1689_v14 = vpop.permute.xlu1 %563 }
 0x1db   :  { %1247 = vmatmul.mubr.msk.bf16.vlgmr.msra.gmra.mxu0 %vm656_vm2, %v1293_v19 }
 0x1dc   :  { %1255 = vmatmul.mubr.msk.bf16.vlgmr.msra.gmra.mxu1 %vm656_vm2, %v1293_v19  ;;  %723 = vmatprep.mubr.bf16.mxu0 %v1880_v7  ;;  %v1687_v13 = vpop.permute.xlu0 %558 }
 0x1dd   :  { %836 = vmatprep.mubr.bf16.mxu1 %v1880_v7  ;;  %1884 = vst [vmem:[#allocation5_spill] sm:$0xff] %v1687_v13 }
 0x1de   :  { %v554_v9 = vpop.permute.xlu1 %553 }
 0x1e0   :  { %v549_v6 = vpop.permute.xlu0 %548 }
 0x1e2   :  { %v544_v12 = vpop.permute.xlu1 %543 }
 0x1e3   :  { %1248 = vmatmul.mubr.msk.bf16.gmra.mxu0 %vm656_vm2, %v1294_v20 }
 0x1e4   :  { %1256 = vmatmul.mubr.msk.bf16.gmra.mxu1 %vm656_vm2, %v1294_v20  ;;  %733 = vmatprep.mubr.bf16.mxu0 %v1880_v7  ;;  %v539_v17 = vpop.permute.xlu0 %538 }
 0x1e5   :  { %846 = vmatprep.mubr.bf16.mxu1 %v1880_v7 }
 0x1eb   :  { %1249 = vmatmul.mubr.msk.bf16.gmra.mxu0 %vm656_vm2, %v1295_v44 }
 0x1ec   :  { %1257 = vmatmul.mubr.msk.bf16.gmra.mxu1 %vm656_vm2, %v1295_v44  ;;  %743 = vmatprep.mubr.bf16.mxu0 %v1880_v7 }
 0x1ed   :  { %856 = vmatprep.mubr.bf16.mxu1 %v1880_v7 }
 0x1f3   :  { %1250 = vmatmul.mubr.msk.bf16.gmra.mxu0 %vm656_vm2, %v1296_v45 }
 0x1f4   :  { %1258 = vmatmul.mubr.msk.bf16.gmra.mxu1 %vm656_vm2, %v1296_v45  ;;  %753 = vmatprep.mubr.bf16.mxu0 %v1880_v7 }
 0x1f5   :  { %866 = vmatprep.mubr.bf16.mxu1 %v1880_v7 }
 0x1fb   :  { %1251 = vmatmul.mubr.msk.bf16.gmra.mxu0 %vm656_vm2, %v1297_v46 }
 0x1fc   :  { %1259 = vmatmul.mubr.msk.bf16.gmra.mxu1 %vm656_vm2, %v1297_v46  ;;  %763 = vmatprep.mubr.bf16.mxu0 %v1880_v7 }
 0x1fd   :  { %876 = vmatprep.mubr.bf16.mxu1 %v1880_v7 }
 0x203   :  { %1252 = vmatmul.mubr.msk.bf16.gmra.mxu0 %vm656_vm2, %v1298_v47 }
 0x204   :  { %1260 = vmatmul.mubr.msk.bf16.gmra.mxu1 %vm656_vm2, %v1298_v47  ;;  %773 = vmatprep.mubr.bf16.mxu0 %v1880_v7 }
 0x205   :  { %886 = vmatprep.mubr.bf16.mxu1 %v1880_v7 }
 0x20b   :  { %1253 = vmatmul.mubr.msk.bf16.gmra.mxu0 %vm656_vm2, %v1299_v50 }
 0x20c   :  { %1261 = vmatmul.mubr.msk.bf16.gmra.mxu1 %vm656_vm2, %v1299_v50  ;;  %783 = vmatprep.mubr.bf16.mxu0 %v1880_v7 }
 0x20d   :  { %896 = vmatprep.mubr.bf16.mxu1 %v1880_v7 }
 0x213   :  { %1254 = vmatmul.mubr.msk.bf16.gmra.mxu0 %vm656_vm2, %v1300_v51 }
 0x214   :  { %1262 = vmatmul.mubr.msk.bf16.gmra.mxu1 %vm656_vm2, %v1300_v51  ;;  %1075 = vmatprep.mubr.bf16.mxu0 %v1880_v7 }
 0x215   :  { %1128 = vmatprep.mubr.bf16.mxu1 %v1880_v7 }
 0x29b   :  { %v715_v55 = vpop.f32.mrf.mxu0 }
 0x29c   :  { %v828_v15 = vpop.f32.mrf.mxu1  ;;  %v716_v11 = vadd.f32 %v715_v55, %v539_v17 }
 0x29d   :  { %v717_v1 = vpop.f32.mrf.mxu0  ;;  %v829_v21 = vadd.f32 %v828_v15, %v539_v17 }
 0x29e   :  { %v830_v57 = vpop.f32.mrf.mxu1  ;;  %v718_v31 = vadd.f32 %v717_v1, %v539_v17  ;;  %v907_v58 = vmax.f32 %v716_v11, 0.0 }
 0x29f   :  { %v719_v26 = vpop.f32.mrf.mxu0  ;;  %v831_v33 = vadd.f32 %v830_v57, %v539_v17  ;;  %v909_v36 = vmax.f32 %v829_v21, 0.0 }
 0x2a0   :  { %v720_v63 = vadd.f32 %v719_v26, %v544_v12  ;;  %v832_v5 = vpop.f32.mrf.mxu1  ;;  %v908_v8 = vmax.f32 %v718_v31, 0.0 }
 0x2a1   :  { %v833_v29 = vadd.f32 %v832_v5, %v544_v12  ;;  %v721_v34 = vpop.f32.mrf.mxu0  ;;  %v910_v53 = vmax.f32 %v831_v33, 0.0 }
 0x2a2   :  { %v911_v30 = vmax.f32 %v720_v63, 0.0  ;;  %v722_v32 = vadd.f32 %v721_v34, %v544_v12  ;;  %v834_v35 = vpop.f32.mrf.mxu1 }
 0x2a3   :  { %v913_v52 = vmax.f32 %v833_v29, 0.0  ;;  %v835_v37 = vadd.f32 %v834_v35, %v544_v12  ;;  %v725_v59 = vpop.f32.mrf.mxu0 }
 0x2a4   :  { %v1691_v24 = vpack.c.bf16 %v911_v30, %v907_v58  ;;  %v912_v38 = vmax.f32 %v722_v32, 0.0  ;;  %v838_v39 = vpop.f32.mrf.mxu1  ;;  %v726_v28 = vadd.f32 %v725_v59, %v549_v6 }
 0x2a5   :  { %v1693_v18 = vpack.c.bf16 %v913_v52, %v909_v36  ;;  %v914_v25 = vmax.f32 %v835_v37, 0.0  ;;  %v727_v22 = vpop.f32.mrf.mxu0  ;;  %v839_v41 = vadd.f32 %v838_v39, %v549_v6 }
 0x2a6   :  { %1885 = vst [vmem:[#allocation6_spill] sm:$0xff] %v1691_v24  ;;  %v1695_v27 = vpack.c.bf16 %v912_v38, %v908_v8  ;;  %v840_v40 = vpop.f32.mrf.mxu1  ;;  %v728_v42 = vadd.f32 %v727_v22, %v549_v6  ;;  %v915_v44 = vmax.f32 %v726_v28, 0.0 }
 0x2a7   :  { %1886 = vst [vmem:[#allocation7_spill] sm:$0xff] %v1693_v18  ;;  %v1697_v48 = vpack.c.bf16 %v914_v25, %v910_v53  ;;  %v729_v23 = vpop.f32.mrf.mxu0  ;;  %v841_v16 = vadd.f32 %v840_v40, %v549_v6  ;;  %v917_v50 = vmax.f32 %v839_v41, 0.0 }
 0x2a8   :  { %1887 = vst [vmem:[#allocation8_spill] sm:$0xff] %v1695_v27  ;;  %v730_v43 = vadd.f32 %v729_v23, %v554_v9  ;;  %v842_v49 = vpop.f32.mrf.mxu1  ;;  %v916_v17 = vmax.f32 %v728_v42, 0.0 }
 0x2a9   :  { %1888 = vst [vmem:[#allocation9_spill] sm:$0xff] %v1697_v48  ;;  %v843_v19 = vadd.f32 %v842_v49, %v554_v9  ;;  %v731_v20 = vpop.f32.mrf.mxu0  ;;  %v918_v12 = vmax.f32 %v841_v16, 0.0 }
 0x2aa   :  { %v919_v45 = vmax.f32 %v730_v43, 0.0  ;;  %v732_v46 = vadd.f32 %v731_v20, %v554_v9  ;;  %v844_v47 = vpop.f32.mrf.mxu1 }
 0x2ab   :  { %v921_v51 = vmax.f32 %v843_v19, 0.0  ;;  %v845_v55 = vadd.f32 %v844_v47, %v554_v9  ;;  %v1699_v15 = vpop.f32.mrf.mxu0 }
 0x2ac   :  { %1889 = vst [vmem:[#allocation10_spill] sm:$0xff] %v1699_v15  ;;  %v1701_v1 = vpack.c.bf16 %v919_v45, %v915_v44  ;;  %v920_v11 = vmax.f32 %v732_v46, 0.0  ;;  %v1703_v57 = vpop.f32.mrf.mxu1 }
 0x2ad   :  { %1891 = vst [vmem:[#allocation12_spill] sm:$0xff] %v1703_v57  ;;  %v1705_v21 = vpack.c.bf16 %v921_v51, %v917_v50  ;;  %v922_v6 = vmax.f32 %v845_v55, 0.0  ;;  %v737_v26 = vpop.f32.mrf.mxu0 }
 0x2ae   :  { %1890 = vst [vmem:[#allocation11_spill] sm:$0xff] %v1701_v1  ;;  %v1707_v31 = vpack.c.bf16 %v920_v11, %v916_v17  ;;  %v850_v63 = vpop.f32.mrf.mxu1  ;;  %v1736_v11 = vadd.f32 %v737_v26, %v1687_v13 }
 0x2af   :  { %1892 = vst [vmem:[#allocation13_spill] sm:$0xff] %v1705_v21  ;;  %v1709_v5 = vpack.c.bf16 %v922_v6, %v918_v12  ;;  %v1711_v33 = vpop.f32.mrf.mxu0  ;;  %v1739_v12 = vadd.f32 %v850_v63, %v1687_v13 }
 0x2b0   :  { %1893 = vst [vmem:[#allocation14_spill] sm:$0xff] %v1707_v31  ;;  %1895 = vst [vmem:[#allocation16_spill] sm:$0xff] %v1711_v33  ;;  %v1713_v9 = vpop.f32.mrf.mxu1 }
 0x2b1   :  { %1894 = vst [vmem:[#allocation15_spill] sm:$0xff] %v1709_v5  ;;  %1896 = vst [vmem:[#allocation17_spill] sm:$0xff] %v1713_v9  ;;  %v741_v29 = vpop.f32.mrf.mxu0 }
 0x2b2   :  { %v854_v34 = vpop.f32.mrf.mxu1  ;;  %1898 = vst [vmem:[#allocation19_spill] sm:$0xff] %v1736_v11  ;;  %1899 = vst [vmem:[#allocation20_spill] sm:$0xff] %v1739_v12  ;;  %v1742_v7 = vadd.f32 %v741_v29, %v1689_v14 }
 0x2b3   :  { %v1715_v58 = vpop.f32.mrf.mxu0  ;;  %v1745_v18 = vadd.f32 %v854_v34, %v1689_v14 }
 0x2b4   :  { %v1717_v30 = vpop.f32.mrf.mxu1  ;;  %1900 = vst [vmem:[#allocation21_spill] sm:$0xff] %v1742_v7 }
 0x2b5   :  { %1897 = vst [vmem:[#allocation18_spill] sm:$0xff] %v1717_v30  ;;  %v747_v32 = vpop.f32.mrf.mxu0  ;;  %1901 = vst [vmem:[#allocation22_spill] sm:$0xff] %v1745_v18 }
 0x2b6   :  { %v860_v35 = vpop.f32.mrf.mxu1  ;;  %v1748_v24 = vadd.f32 %v747_v32, %v1683_v4 }
 0x2b7   :  { %v1719_v36 = vpop.f32.mrf.mxu0  ;;  %v1751_v48 = vadd.f32 %v860_v35, %v1683_v4 }
 0x2b8   :  { %v1721_v52 = vpop.f32.mrf.mxu1  ;;  %1902 = vst [vmem:[#allocation23_spill] sm:$0xff] %v1748_v24 }
 0x2b9   :  { %v751_v37 = vpop.f32.mrf.mxu0  ;;  %1903 = vst [vmem:[#allocation24_spill] sm:$0xff] %v1751_v48 }
 0x2ba   :  { %v864_v59 = vpop.f32.mrf.mxu1  ;;  %v1754_v26 = vadd.f32 %v751_v37, %v1685_v10 }
 0x2bb   :  { %v1723_v8 = vpop.f32.mrf.mxu0  ;;  %v1757_v63 = vadd.f32 %v864_v59, %v1685_v10 }
 0x2bc   :  { %v1725_v38 = vpop.f32.mrf.mxu1 }
 0x2bd   :  { %v757_v39 = vpop.f32.mrf.mxu0 }
 0x2be   :  { %v870_v53 = vpop.f32.mrf.mxu1  ;;  %v1760_v21 = vadd.f32 %v757_v39, %v1679_v2 }
 0x2bf   :  { %v1727_v25 = vpop.f32.mrf.mxu0  ;;  %v1763_v29 = vadd.f32 %v870_v53, %v1679_v2 }
 0x2c0   :  { %v1729_v22 = vpop.f32.mrf.mxu1 }
 0x2c1   :  { %v761_v28 = vpop.f32.mrf.mxu0 }
 0x2c2   :  { %v874_v40 = vpop.f32.mrf.mxu1  ;;  %v1766_v32 = vadd.f32 %v761_v28, %v1681_v3 }
 0x2c3   :  { %v1731_v41 = vpop.f32.mrf.mxu0  ;;  %v1769_v35 = vadd.f32 %v874_v40, %v1681_v3 }
 0x2c4   :  { %v1733_v23 = vpop.f32.mrf.mxu1 }
 0x2c5   :  { %v767_v42 = vpop.f32.mrf.mxu0 }
 0x2c6   :  { %v880_v43 = vpop.f32.mrf.mxu1  ;;  %v1772_v1 = vadd.f32 %v767_v42, %v1675_v62 }
 0x2c7   :  { %v769_v49 = vpop.f32.mrf.mxu0  ;;  %v1775_v37 = vadd.f32 %v880_v43, %v1675_v62 }
 0x2c8   :  { %v882_v16 = vpop.f32.mrf.mxu1  ;;  %v1778_v39 = vadd.f32 %v769_v49, %v1677_v0 }
 0x2c9   :  { %v771_v19 = vpop.f32.mrf.mxu0  ;;  %v1781_v53 = vadd.f32 %v882_v16, %v1677_v0 }
 0x2ca   :  { %v884_v20 = vpop.f32.mrf.mxu1  ;;  %v1784_v5 = vadd.f32 %v771_v19, %v1677_v0 }
 0x2cb   :  { %v775_v44 = vpop.f32.mrf.mxu0  ;;  %v1787_v28 = vadd.f32 %v884_v20, %v1677_v0 }
 0x2cc   :  { %v888_v45 = vpop.f32.mrf.mxu1  ;;  %v776_v42 = vadd.f32 %v775_v44, %v1671_v60 }
 0x2cd   :  { %v777_v46 = vpop.f32.mrf.mxu0 }
 0x2ce   :  { %v890_v47 = vpop.f32.mrf.mxu1  ;;  %v778_v20 = vadd.f32 %v777_v46, %v1671_v60 }
 0x2cf   :  { %v779_v50 = vpop.f32.mrf.mxu0  ;;  %v891_v44 = vadd.f32 %v890_v47, %v1671_v60 }
 0x2d0   :  { %v892_v51 = vpop.f32.mrf.mxu1 }
 0x2d1   :  { %v781_v55 = vpop.f32.mrf.mxu0  ;;  %v958_v30 = vmax.f32 %v891_v44, 0.0  ;;  %v1906_v44 = vld [vmem:[#allocation23_spill] sm:$0xff] }
 0x2d2   :  { %v894_v17 = vpop.f32.mrf.mxu1  ;;  %v782_v31 = vadd.f32 %v781_v55, %v1673_v61 }
 0x2d3   :  { %v785_v6 = vpop.f32.mrf.mxu0  ;;  %v895_v11 = vadd.f32 %v894_v17, %v1673_v61  ;;  %v893_v17 = vadd.f32 %v892_v51, %v1673_v61  ;;  %v952_v51 = vmax.f32 %v1784_v5, 0.0 }
 0x2d4   :  { %v898_v27 = vpop.f32.mrf.mxu1  ;;  %v786_v16 = vadd.f32 %v785_v6, %v1667_v54 }
 0x2d5   :  { %v787_v34 = vpop.f32.mrf.mxu0  ;;  %v899_v55 = vadd.f32 %v898_v27, %v1667_v54  ;;  %v962_v48 = vmax.f32 %v895_v11, 0.0  ;;  %v956_v27 = vmax.f32 %v778_v20, 0.0  ;;  %v954_v11 = vmax.f32 %v1787_v28, 0.0 }
 0x2d6   :  { %v900_v59 = vpop.f32.mrf.mxu1  ;;  %v788_v43 = vadd.f32 %v787_v34, %v1667_v54  ;;  %v963_v46 = vmax.f32 %v786_v16, 0.0 }
 0x2d7   :  { %v789_v40 = vpop.f32.mrf.mxu0  ;;  %v901_v19 = vadd.f32 %v900_v59, %v1667_v54  ;;  %v960_v59 = vmax.f32 %v782_v31, 0.0  ;;  %v889_v54 = vadd.f32 %v888_v45, %v1671_v60  ;;  %v998_v60 = vpack.c.bf16 %v962_v48, %v958_v30 }
 0x2d8   :  { %v790_v12 = vadd.f32 %v789_v40, %v1669_v56  ;;  %v902_v49 = vpop.f32.mrf.mxu1  ;;  %v780_v40 = vadd.f32 %v779_v50, %v1673_v61  ;;  %v964_v13 = vmax.f32 %v788_v43, 0.0  ;;  %v951_v48 = vmax.f32 %v1778_v39, 0.0 }
 0x2d9   :  { %v903_v57 = vadd.f32 %v902_v49, %v1669_v56  ;;  %v791_v0 = vpop.f32.mrf.mxu0  ;;  %v966_v9 = vmax.f32 %v901_v19, 0.0  ;;  %v957_v5 = vmax.f32 %v889_v54, 0.0  ;;  %v863_v39 = vadd.f32 %v1721_v52, %v1685_v10 }
 0x2da   :  { %v792_v34 = vadd.f32 %v791_v0, %v1669_v56  ;;  %v904_v18 = vpop.f32.mrf.mxu1  ;;  %v967_v15 = vmax.f32 %v790_v12, 0.0  ;;  %v965_v0 = vmax.f32 %v899_v55, 0.0  ;;  %v959_v50 = vmax.f32 %v780_v40, 0.0 }
 0x2db   :  { %v905_v6 = vadd.f32 %v904_v18, %v1669_v56  ;;  %v969_v49 = vmax.f32 %v903_v57, 0.0  ;;  %v961_v56 = vmax.f32 %v893_v17, 0.0  ;;  %v996_v18 = vpack.c.bf16 %v960_v59, %v956_v27  ;;  %v1909_v59 = vld [vmem:[#allocation21_spill] sm:$0xff] }
 0x2dc   :  { %v968_v7 = vmax.f32 %v792_v34, 0.0  ;;  %v999_v33 = vpack.c.bf16 %v967_v15, %v963_v46  ;;  %v766_v57 = vadd.f32 %v1731_v41, %v1675_v62  ;;  %v955_v12 = vmax.f32 %v776_v42, 0.0  ;;  %v1907_v34 = vld [vmem:[#allocation17_spill] sm:$0xff] }
 0x2dd   :  { %v970_v47 = vmax.f32 %v905_v6, 0.0  ;;  %v1001_v31 = vpack.c.bf16 %v969_v49, %v965_v0  ;;  %v948_v15 = vmax.f32 %v1772_v1, 0.0  ;;  %v756_v1 = vadd.f32 %v1723_v8, %v1679_v2  ;;  %v1910_v27 = vld [vmem:[#allocation5_spill] sm:$0xff] }
 0x2de   :  { %v1000_v24 = vpack.c.bf16 %v968_v7, %v964_v13  ;;  %v760_v7 = vadd.f32 %v1727_v25, %v1681_v3  ;;  %v879_v13 = vadd.f32 %v1733_v23, %v1675_v62  ;;  %v995_v30 = vpack.c.bf16 %v959_v50, %v955_v12  ;;  %v1912_v50 = vld [vmem:[#allocation22_spill] sm:$0xff]  ;;  %v1915_v12 = vld [vmem:[#allocation20_spill] sm:$0xff] }
 0x2df   :  { %v1002_v61 = vpack.c.bf16 %v970_v47, %v966_v9  ;;  %v950_v9 = vmax.f32 %v1775_v37, 0.0  ;;  %v953_v25 = vmax.f32 %v1781_v53, 0.0  ;;  %v992_v41 = vpack.c.bf16 %v952_v51, %v948_v15 }
 0x2e0   :  { %1043 = vmatprep.subr.bf16.mxu0 %v1000_v24  ;;  %v873_v24 = vadd.f32 %v1729_v22, %v1681_v3  ;;  %v997_v62 = vpack.c.bf16 %v961_v56, %v957_v5  ;;  %v946_v23 = vmax.f32 %v1769_v35, 0.0  ;;  %v947_v45 = vmax.f32 %v766_v57, 0.0 }
 0x2e1   :  { %1096 = vmatprep.subr.bf16.mxu1 %v1002_v61  ;;  %1044 = vmatpush1.bf16.msra.mxu0 %v999_v33  ;;  %v944_v33 = vmax.f32 %v1766_v32, 0.0  ;;  %v994_v28 = vpack.c.bf16 %v954_v11, %v950_v9  ;;  %v750_v3 = vadd.f32 %v1719_v36, %v1685_v10  ;;  %v869_v22 = vadd.f32 %v1725_v38, %v1679_v2  ;;  %v1904_v10 = vld [vmem:[#allocation16_spill] sm:$0xff] }
 0x2e2   :  { %1097 = vmatpush1.bf16.msra.mxu1 %v1001_v31  ;;  %1045 = vmatprep.subr.bf16.mxu0 %v996_v18  ;;  %v940_v32 = vmax.f32 %v1760_v21, 0.0  ;;  %v949_v37 = vmax.f32 %v879_v13, 0.0  ;;  %v942_v8 = vmax.f32 %v1763_v29, 0.0  ;;  %v943_v35 = vmax.f32 %v760_v7, 0.0  ;;  %v1905_v29 = vld [vmem:[#allocation18_spill] sm:$0xff]  ;;  %v1914_v31 = vld [vmem:[#allocation19_spill] sm:$0xff] }
 0x2e3   :  { %1098 = vmatprep.subr.bf16.mxu1 %v998_v60  ;;  %v991_v53 = vpack.c.bf16 %v951_v48, %v947_v45  ;;  %v936_v42 = vmax.f32 %v1754_v26, 0.0  ;;  %v945_v43 = vmax.f32 %v873_v24, 0.0  ;;  %v746_v2 = vadd.f32 %v1715_v58, %v1683_v4  ;;  %v1908_v58 = vld [vmem:[#allocation24_spill] sm:$0xff] }
 0x2e4   :  { %v988_v36 = vpack.c.bf16 %v944_v33, %v940_v32  ;;  %v993_v16 = vpack.c.bf16 %v953_v25, %v949_v37  ;;  %v938_v21 = vmax.f32 %v1757_v63, 0.0  ;;  %v939_v38 = vmax.f32 %v756_v1, 0.0  ;;  %v1918_v1 = vld [vmem:[#allocation11_spill] sm:$0xff]  ;;  %v1920_v45 = vld [vmem:[#allocation8_spill] sm:$0xff] }
 0x2e5   :  { %1046 = vmatpush1.bf16.msra.mxu0 %v995_v30  ;;  %v990_v19 = vpack.c.bf16 %v946_v23, %v942_v8  ;;  %v740_v52 = vadd.f32 %v1904_v10, %v1689_v14  ;;  %v859_v20 = vadd.f32 %v1905_v29, %v1683_v4  ;;  %v932_v55 = vmax.f32 %v1906_v44, 0.0  ;;  %v1911_v4 = vld [vmem:[#allocation10_spill] sm:$0xff]  ;;  %v1919_v23 = vld [vmem:[#allocation13_spill] sm:$0xff]  ;;  %v1923_v32 = vld [vmem:[#allocation7_spill] sm:$0xff] }
 0x2e6   :  { %1099 = vmatpush1.bf16.msra.mxu1 %v997_v62  ;;  %1047 = vmatprep.subr.bf16.mxu0 %v992_v41  ;;  %v941_v26 = vmax.f32 %v869_v22, 0.0  ;;  %v853_v40 = vadd.f32 %v1907_v34, %v1689_v14  ;;  %v934_v17 = vmax.f32 %v1908_v58, 0.0  ;;  %v935_v63 = vmax.f32 %v750_v3, 0.0  ;;  %v1913_v14 = vld [vmem:[#allocation12_spill] sm:$0xff]  ;;  %v1916_v41 = vld [vmem:[#allocation14_spill] sm:$0xff]  ;;  %v1917_v62 = vld [vmem:[#allocation15_spill] sm:$0xff] }
 0x2e7   :  { %1100 = vmatprep.subr.bf16.mxu1 %v994_v28  ;;  %v987_v6 = vpack.c.bf16 %v943_v35, %v939_v38  ;;  %v928_v49 = vmax.f32 %v1909_v59, 0.0  ;;  %v937_v46 = vmax.f32 %v863_v39, 0.0  ;;  %v984_v47 = vpack.c.bf16 %v936_v42, %v932_v55  ;;  %v1921_v28 = vld [vmem:[#allocation9_spill] sm:$0xff]  ;;  %v1922_v22 = vld [vmem:[#allocation6_spill] sm:$0xff] }
 0x2e8   :  { %v989_v54 = vpack.c.bf16 %v945_v43, %v941_v26  ;;  %v736_v0 = vadd.f32 %v1911_v4, %v1910_v27  ;;  %v930_v61 = vmax.f32 %v1912_v50, 0.0  ;;  %v931_v51 = vmax.f32 %v746_v2, 0.0  ;;  %v1301_v3 = vld [vmem:[%s1877_s7] sm:$0xff]   ;;  %v1302_v39 = vld [vmem:[%s1877_s7 + $0x8] sm:$0xff]   ;;  %s1326_s7 = smov [#allocation2]  }
 0x2e9   :  { %1048 = vmatpush1.bf16.msra.mxu0 %v991_v53  ;;  %v986_v56 = vpack.c.bf16 %v938_v21, %v934_v17  ;;  %v849_v18 = vadd.f32 %v1913_v14, %v1910_v27  ;;  %v924_v57 = vmax.f32 %v1914_v31, 0.0  ;;  %v933_v11 = vmax.f32 %v859_v20, 0.0  ;;  %v1014_v53 = vpop.permute.xlu0 %1013  ;;  %s1210_s19 = sshll.u32 %s1326_s7, 4  ;;  %s1211_s19 = int_to_ptr.vmem [resolvable:$true] %s1210_s19 }
 0x2ea   :  { %1101 = vmatpush1.bf16.msra.mxu1 %v993_v16  ;;  %1049 = vmatprep.subr.bf16.mxu0 %v988_v36  ;;  %v926_v60 = vmax.f32 %v1915_v12, 0.0  ;;  %v927_v7 = vmax.f32 %v740_v52, 0.0  ;;  %v983_v13 = vpack.c.bf16 %v935_v63, %v931_v51  ;;  %v929_v15 = vmax.f32 %v853_v40, 0.0  ;;  %v1019_v52 = vpop.permute.xlu1 %1018  ;;  %s1303_s6 = scalar_lea.vmem %s1211_s19, 1024  ;;  %p1308_p1 = scmp.lt.s32.totalorder %s1211_s19, %s1211_s19 }
 0x2eb   :  { %1102 = vmatprep.subr.bf16.mxu1 %v990_v19  ;;  %v980_v5 = vpack.c.bf16 %v928_v49, %v924_v57  ;;  %v985_v24 = vpack.c.bf16 %v937_v46, %v933_v11  ;;  %v923_v9 = vmax.f32 %v736_v0, 0.0  ;;  %v925_v30 = vmax.f32 %v849_v18, 0.0  ;;  %p1304_p0 = scmp.ne.s32.totalorder %s1211_s19, %s1303_s6  ;;  %p1309_p2 = scmp.lt.s32.totalorder %s1303_s6, %s1303_s6 }
 0x2ec   :  { %v982_v48 = vpack.c.bf16 %v930_v61, %v926_v60  ;;  %v1924_v37 = vmov 0  }
 0x2ed   :  { %1050 = vmatpush1.bf16.msra.mxu0 %v987_v6  ;;  %v979_v33 = vpack.c.bf16 %v927_v7, %v923_v9  ;;  %v981_v25 = vpack.c.bf16 %v929_v15, %v925_v30  ;;  %v1024_v6 = vpop.permute.xlu0 %1023  ;;  %p1310_p3 = por %p1309_p2, %p1308_p1 }
 0x2ee   :  { %1103 = vmatpush1.bf16.msra.mxu1 %v989_v54  ;;  %1051 = vmatprep.subr.bf16.mxu0 %v984_v47  ;;  %v1029_v51 = vpop.permute.xlu1 %1028 }
 0x2ef   :  { %1104 = vmatprep.subr.bf16.mxu1 %v986_v56  ;;  %p1311_p4 = pnand %p1310_p3, %p1304_p0 }
 0x2f1   :  { %1052 = vmatpush1.bf16.msra.mxu0 %v983_v13 }
 0x2f2   :  { %1105 = vmatpush1.bf16.msra.mxu1 %v985_v24  ;;  %1053 = vmatprep.subr.bf16.mxu0 %v980_v5 }
 0x2f3   :  { %1106 = vmatprep.subr.bf16.mxu1 %v982_v48 }
 0x2f5   :  { %1054 = vmatpush1.bf16.msra.mxu0 %v979_v33 }
 0x2f6   :  { %1107 = vmatpush1.bf16.msra.mxu1 %v981_v25  ;;  %1055 = vmatprep.subr.bf16.mxu0 %v1916_v41 }
 0x2f7   :  { %1108 = vmatprep.subr.bf16.mxu1 %v1917_v62 }
 0x2f9   :  { %1056 = vmatpush1.bf16.msra.mxu0 %v1918_v1 }
 0x2fa   :  { %1109 = vmatpush1.bf16.msra.mxu1 %v1919_v23  ;;  %1057 = vmatprep.subr.bf16.mxu0 %v1920_v45 }
 0x2fb   :  { %1110 = vmatprep.subr.bf16.mxu1 %v1921_v28 }
 0x2fd   :  { %1058 = vmatpush1.bf16.msra.mxu0 %v1922_v22 }
 0x2fe   :  { %1111 = vmatpush1.bf16.msra.mxu1 %v1923_v32 }
 0x300   :  { %1076 = vmatmul.mubr.bf16.vlgmr.msra.gmra.mxu0 %v1301_v3 }
 0x301   :  { %1129 = vmatmul.mubr.bf16.vlgmr.msra.gmra.mxu1 %v1301_v3  ;;  %1085 = vmatprep.mubr.bf16.mxu0 %v1924_v37 }
 0x302   :  { %1138 = vmatprep.mubr.bf16.mxu1 %v1924_v37 }
 0x308   :  { %1086 = vmatmul.mubr.bf16.gmra.mxu0 %v1302_v39 }
 0x309   :  { %1139 = vmatmul.mubr.bf16.gmra.mxu1 %v1302_v39 }
 0x3c0   :  { %v1077_v8 = vpop.f32.mrf.mxu0 }
 0x3c1   :  { %v1130_v35 = vpop.f32.mrf.mxu1  ;;  %v1078_v43 = vadd.f32 %v1077_v8, %v1014_v53 }
 0x3c2   :  { %v1079_v42 = vpop.f32.mrf.mxu0  ;;  %v1131_v2 = vadd.f32 %v1130_v35, %v1014_v53 }
 0x3c3   :  { %v1080_v36 = vadd.f32 %v1079_v42, %v1014_v53  ;;  %v1132_v16 = vpop.f32.mrf.mxu1 }
 0x3c4   :  { %v1133_v21 = vadd.f32 %v1132_v16, %v1014_v53  ;;  %v1081_v38 = vpop.f32.mrf.mxu0 }
 0x3c5   :  { %v1273_v19 = vpack.c.bf16 %v1080_v36, %v1078_v43  ;;  %v1134_v10 = vpop.f32.mrf.mxu1  ;;  %v1082_v44 = vadd.f32 %v1081_v38, %v1019_v52 }
 0x3c6   :  { %v1274_v29 = vpack.c.bf16 %v1133_v21, %v1131_v2  ;;  %v1083_v20 = vpop.f32.mrf.mxu0  ;;  %v1135_v34 = vadd.f32 %v1134_v10, %v1019_v52 }
 0x3c7   :  { %1197 = vst [vmem:[#allocation2] sm:$0xff] %v1273_v19  ;;  %v1084_v55 = vadd.f32 %v1083_v20, %v1019_v52  ;;  %v1136_v26 = vpop.f32.mrf.mxu1 }
 0x3c8   :  { %1198 = vst [vmem:[#allocation2 + $0x8] sm:$0xff] %v1274_v29  ;;  %v1137_v40 = vadd.f32 %v1136_v26, %v1019_v52  ;;  %v1087_v58 = vpop.f32.mrf.mxu0 }
 0x3c9   :  { %v1275_v17 = vpack.c.bf16 %v1084_v55, %v1082_v44  ;;  %v1140_v63 = vpop.f32.mrf.mxu1  ;;  %v1088_v46 = vadd.f32 %v1087_v58, %v1024_v6 }
 0x3ca   :  { %v1276_v59 = vpack.c.bf16 %v1137_v40, %v1135_v34  ;;  %v1089_v49 = vpop.f32.mrf.mxu0  ;;  %v1141_v27 = vadd.f32 %v1140_v63, %v1024_v6 }
 0x3cb   :  { %1199 = vst [vmem:[#allocation2 + $0x10] sm:$0xff] %v1275_v17  ;;  %v1090_v47 = vadd.f32 %v1089_v49, %v1024_v6  ;;  %v1142_v54 = vpop.f32.mrf.mxu1 }
 0x3cc   :  { %1200 = vst [vmem:[#allocation2 + $0x18] sm:$0xff] %v1276_v59  ;;  %v1143_v4 = vadd.f32 %v1142_v54, %v1024_v6  ;;  %v1091_v0 = vpop.f32.mrf.mxu0 }
 0x3cd   :  { %v1277_v50 = vpack.c.bf16 %v1090_v47, %v1088_v46  ;;  %v1144_v61 = vpop.f32.mrf.mxu1  ;;  %v1092_v18 = vadd.f32 %v1091_v0, %v1029_v51 }
 0x3ce   :  { %v1278_v56 = vpack.c.bf16 %v1143_v4, %v1141_v27  ;;  %v1093_v14 = vpop.f32.mrf.mxu0  ;;  %v1145_v11 = vadd.f32 %v1144_v61, %v1029_v51 }
 0x3cf   :  { %1201 = vst [vmem:[#allocation2 + $0x20] sm:$0xff] %v1277_v50  ;;  %v1094_v31 = vadd.f32 %v1093_v14, %v1029_v51  ;;  %v1146_v57 = vpop.f32.mrf.mxu1 }
 0x3d0   :  { %1202 = vst [vmem:[#allocation2 + $0x28] sm:$0xff] %v1278_v56  ;;  %v1147_v12 = vadd.f32 %v1146_v57, %v1029_v51 }
 0x3d1   :  { %v1279_v60 = vpack.c.bf16 %v1094_v31, %v1092_v18 }
 0x3d2   :  { %v1280_v7 = vpack.c.bf16 %v1147_v12, %v1145_v11 }
 0x3d3   :  { %1203 = vst [vmem:[#allocation2 + $0x30] sm:$0xff] %v1279_v60 }
 0x3d4   :  { %1204 = vst [vmem:[#allocation2 + $0x38] sm:$0xff] %v1280_v7 }
 0x3d5   :  { %1314 = shalt.err (!%p1311_p4)
}
 0x3d6   :  { %s1327_s8 = smov 256   ;;  %s1328_s20 = smov 16  }
 0x3d7   :  { %1216 = dma.vmem_to_hbm [thread:$0]  %s1211_s19, 1024, %s1879_s9, [#allocation3], %s1327_s8, %s1327_s8, %s1328_s20  }
 0x3d8   :  { %1323 = dma.done.wait [#allocation3], 1024  }
 0x3d9   :  { %1324 = vsyncadd [#allocation3], 4294966272 }
 0x3da   :  { %1220 = vsyncpa [#allocation3], 1 }

</bundles_post_ra>
